<compile_context>
chip_gen: v7x
topology: tpu7x:2x2x1
jax: 0.10.0
libtpu: 0.0.40
codegen_flags: <defaults>
</compile_context>

<pallas_src>
import functools

import jax
import jax.numpy as jnp
from jax.experimental import pallas as pl
from jax.experimental.pallas import tpu as pltpu


def _ce_kernel(logits_ref, target_ref, out_ref, *, voxel, fold):
    # logits_ref: (C, tile_r, 128)   target_ref: (tile_r, 128)   out_ref: (acc_rows, 128)
    v = pl.program_id(1)
    logits = logits_ref[...].astype(jnp.float32)
    tgt = target_ref[...].astype(jnp.int32)          # in-kernel cast: no host-side pass
    tile_r = tgt.shape[0]

    # numerically stable log-sum-exp over the class axis (outer dim -> per-class
    # full-vreg VALU/EUP ops; no sublane padding, no XLU reduce)
    m = jnp.max(logits, axis=0)                       # (tile_r, 128)
    lse = jnp.log(jnp.sum(jnp.exp(logits - m[None]), axis=0)) + m

    # gather the logit at the target class: one-hot compare + select + sum (VALU)
    # TODO(synk): no ignore_index / out-of-range target check (PyTorch would raise).
    cls = jax.lax.broadcasted_iota(jnp.int32, logits.shape, 0)
    picked = jnp.sum(jnp.where(cls == tgt[None], logits, 0.0), axis=0)

    loss = lse - picked                               # (tile_r, 128) per-voxel NLL

    def write(x):
        if fold:   # fold rows into one sublane-dense (8, 128) vreg -> unmasked store
            x = jnp.sum(x.reshape(x.shape[0] // 8, 8, 128), axis=0)
        out_ref[...] = x

    last = pl.num_programs(1) - 1

    @pl.when(v != last)
    def _():                                          # full tiles: no mask work at all
        write(loss)

    @pl.when(v == last)
    def _():
        # Ragged tail: lanes/rows past `voxel` hold pad or garbage (OOB block reads).
        # jnp.where is a per-lane SELECT, so NaN/Inf in masked lanes can never
        # contaminate valid lanes — do NOT replace with a multiply-by-mask.
        row = jax.lax.broadcasted_iota(jnp.int32, loss.shape, 0)
        lane = jax.lax.broadcasted_iota(jnp.int32, loss.shape, 1)
        idx = (v * tile_r + row) * 128 + lane
        write(jnp.where(idx < voxel, loss, 0.0))


def _vmem_capacity_bytes():
    try:
        return int(pltpu.get_tpu_info().vmem_capacity_bytes)
    except Exception:
        return 64 * 2**20                             # v7x-safe fallback


def _pick_tile_rows(R, C, itemsize, vmem_cap, requested=None):
    """Rows (of 128 voxels) per step: multiple of 8, ~2 MiB logits/step on 64 MiB-VMEM
    parts (v7x), ~4 MiB on the 128 MiB parts (v5e/v6e)."""
    if requested is not None:
        tr = int(requested)
    else:
        target = 4 * 2**20 if vmem_cap >= 100 * 2**20 else 2 * 2**20
        tr = target // max(1, C * 128 * itemsize)
        tr = min(max(tr, 8), 2048)
    if tr >= R:
        return R                                      # single tile: block dim == full dim
    return max(8, (tr // 8) * 8)


def cross_entropy_3d(pred_tensor, target_tensor, class_num, x, y, z, tile_rows=None):
    """pred_tensor: (B, C, X, Y, Z) float (f32/bf16); target_tensor: (B, X, Y, Z) int."""
    voxel = x * y * z
    C = class_num
    B = pred_tensor.size // (C * voxel)
    N = B * voxel

    R = pl.cdiv(voxel, 128)                           # rows of 128 voxels
    P = R * 128

    logits = pred_tensor.reshape(B, C, voxel)
    targets = target_tensor.reshape(B, voxel)         # native dtype; cast inside kernel
    if P != voxel:
        # ragged voxel count: one pad pass; pure (free) reshape when voxel % 128 == 0
        logits = jnp.pad(logits, ((0, 0), (0, 0), (0, P - voxel)))
        targets = jnp.pad(targets, ((0, 0), (0, P - voxel)))
    logits = logits.reshape(B, C, R, 128)
    targets = targets.reshape(B, R, 128)

    itemsize = jnp.dtype(logits.dtype).itemsize
    tgt_itemsize = jnp.dtype(targets.dtype).itemsize
    vmem_cap = _vmem_capacity_bytes()
    tile_r = _pick_tile_rows(R, C, itemsize, vmem_cap, tile_rows)
    n_tiles = pl.cdiv(R, tile_r)
    fold = tile_r >= 8 and tile_r % 8 == 0
    acc_rows = 8 if fold else tile_r

    # VMEM budget: double-buffered I/O blocks + in-kernel f32 temporaries, with
    # headroom below the physical capacity (v7x has only 64 MiB per TensorCore).
    blk = tile_r * 128
    vmem_need = (2 * C * blk * itemsize               # logits blocks (x2 buffers)
                 + 2 * blk * tgt_itemsize             # target blocks
                 + 2 * acc_rows * 128 * 4             # output blocks
                 + 4 * C * blk * 4                    # f32 cast / exp / iota / select temps
                 + 8 * blk * 4)                       # (tile_r,128) f32 temps (m,lse,...)
    cap = min(48 * 2**20, (vmem_cap * 3) // 4)
    vmem_limit = int(min(cap, max(vmem_need + (4 << 20), 16 << 20)))

    kernel = functools.partial(_ce_kernel, voxel=voxel, fold=fold)
    partials = pl.pallas_call(
        kernel,
        out_shape=jax.ShapeDtypeStruct((B, n_tiles, acc_rows, 128), jnp.float32),
        grid_spec=pltpu.PrefetchScalarGridSpec(
            num_scalar_prefetch=0,
            grid=(B, n_tiles),
            in_specs=[
                pl.BlockSpec((None, C, tile_r, 128), lambda b, v: (b, 0, v, 0)),
                pl.BlockSpec((None, tile_r, 128), lambda b, v: (b, v, 0)),
            ],
            out_specs=pl.BlockSpec((None, None, acc_rows, 128),
                                   lambda b, v: (b, v, 0, 0)),
        ),
        compiler_params=pltpu.CompilerParams(
            dimension_semantics=("parallel", "parallel"),
            vmem_limit_bytes=vmem_limit),
        cost_estimate=pl.CostEstimate(
            flops=int(7 * B * P * C),
            transcendentals=int(B * P * (C + 1)),
            bytes_accessed=int(B * P * (C * itemsize + tgt_itemsize)
                               + B * n_tiles * acc_rows * 128 * 4)),
    )(logits, targets)

    # tiny two-level reduction (per-tile partials -> scalar mean) in plain JAX
    return jnp.sum(partials) / jnp.float32(N)


def _ref_loss(pred, target, C, voxel):
    B = pred.size // (C * voxel)
    logp = jax.nn.log_softmax(pred.reshape(B, C, voxel).astype(jnp.float32), axis=1)
    picked = jnp.take_along_axis(logp, target.reshape(B, 1, voxel).astype(jnp.int32), axis=1)
    return -jnp.mean(picked)


if __name__ == "__main__":
    key = jax.random.PRNGKey(0)

    # 1) module config (class_num=4, x=y=z=4): voxel=64 < 128, single padded tile
    C1, X1, Y1, Z1, B1 = 4, 4, 4, 4, 2
    k1, k2, key = jax.random.split(key, 3)
    pred1 = jax.random.normal(k1, (B1, C1, X1, Y1, Z1), dtype=jnp.float32)
    tgt1 = jax.random.randint(k2, (B1, X1, Y1, Z1), 0, C1, dtype=jnp.int32)
    loss1 = jax.block_until_ready(cross_entropy_3d(pred1, tgt1, C1, X1, Y1, Z1))
    ref1 = _ref_loss(pred1, tgt1, C1, X1 * Y1 * Z1)
    assert jnp.allclose(loss1, ref1, atol=3e-5, rtol=1e-5), (loss1, ref1)

    # 2) multi-tile, voxel % 128 == 0 (no host pad), B=1, fold path, OOB last block
    C2, X2, Y2, Z2, B2 = 3, 16, 16, 9, 1              # voxel = 2304 = 18*128, 3 tiles of 8 rows
    k1, k2, key = jax.random.split(key, 3)
    pred2 = jax.random.normal(k1, (B2, C2, X2, Y2, Z2), dtype=jnp.float32)
    tgt2 = jax.random.randint(k2, (B2, X2, Y2, Z2), 0, C2, dtype=jnp.int32)
    loss2 = jax.block_until_ready(
        cross_entropy_3d(pred2, tgt2, C2, X2, Y2, Z2, tile_rows=8))
    ref2 = _ref_loss(pred2, tgt2, C2, X2 * Y2 * Z2)
    assert jnp.allclose(loss2, ref2, atol=3e-5, rtol=1e-5), (loss2, ref2)

    # 3) multi-tile, ragged voxel (host pad + masked tail), B=2
    C3, X3, Y3, Z3, B3 = 5, 11, 11, 11, 2             # voxel = 1331 -> R=11, 2 tiles of 8 rows
    k1, k2, key = jax.random.split(key, 3)
    pred3 = jax.random.normal(k1, (B3, C3, X3, Y3, Z3), dtype=jnp.float32)
    tgt3 = jax.random.randint(k2, (B3, X3, Y3, Z3), 0, C3, dtype=jnp.int32)
    loss3 = jax.block_until_ready(
        cross_entropy_3d(pred3, tgt3, C3, X3, Y3, Z3, tile_rows=8))
    ref3 = _ref_loss(pred3, tgt3, C3, X3 * Y3 * Z3)
    assert jnp.allclose(loss3, ref3, atol=3e-5, rtol=1e-5), (loss3, ref3)

    print("KERNEL_OK")
</pallas_src>

<mosaic_0001>
module attributes {stable_mosaic.version = 11 : i64} {
  func.func @_ce_kernel(%arg0: i32, %arg1: i32, %arg2: memref<1x4x1x128xf32, #tpu.memory_space<vmem>>, %arg3: memref<1x1x128xi32, #tpu.memory_space<vmem>>, %arg4: memref<1x1x1x128xf32, #tpu.memory_space<vmem>>) attributes {dimension_semantics = [#tpu.dimension_semantics<parallel>, #tpu.dimension_semantics<parallel>], iteration_bounds = array<i64: 2, 1>, scalar_prefetch = 0 : i64, scratch_operands = 0 : i64, tpu.core_type = #tpu.core_type<tc>, window_params = [{transform_indices = @transform_0, window_bounds = array<i64: 1, 4, 1, 128>}, {transform_indices = @transform_1, window_bounds = array<i64: 1, 1, 128>}, {transform_indices = @transform_2, window_bounds = array<i64: 1, 1, 1, 128>}]} {
    %c0 = arith.constant 0 : index
    %c0_0 = arith.constant 0 : index
    %c0_1 = arith.constant 0 : index
    %c0_2 = arith.constant 0 : index
    %0 = vector.load %arg2[%c0, %c0_0, %c0_1, %c0_2] : memref<1x4x1x128xf32, #tpu.memory_space<vmem>>, vector<1x4x1x128xf32>
    %1 = vector.shape_cast %0 : vector<1x4x1x128xf32> to vector<4x1x128xf32>
    %c0_3 = arith.constant 0 : index
    %c0_4 = arith.constant 0 : index
    %c0_5 = arith.constant 0 : index
    %2 = vector.load %arg3[%c0_3, %c0_4, %c0_5] : memref<1x1x128xi32, #tpu.memory_space<vmem>>, vector<1x1x128xi32>
    %3 = vector.shape_cast %2 : vector<1x1x128xi32> to vector<1x128xi32>
    %cst = arith.constant dense<0xFF800000> : vector<1x128xf32>
    %4 = vector.multi_reduction <maximumf>, %1, %cst [0] : vector<4x1x128xf32> to vector<1x128xf32>
    %5 = vector.shape_cast %4 : vector<1x128xf32> to vector<1x1x128xf32>
    %6 = vector.broadcast %5 : vector<1x1x128xf32> to vector<4x1x128xf32>
    %7 = arith.subf %1, %6 : vector<4x1x128xf32>
    %8 = math.exp %7 : vector<4x1x128xf32>
    %cst_6 = arith.constant dense<0.000000e+00> : vector<1x128xf32>
    %9 = vector.multi_reduction <add>, %8, %cst_6 [0] : vector<4x1x128xf32> to vector<1x128xf32>
    %10 = math.log %9 : vector<1x128xf32>
    %11 = arith.addf %10, %4 : vector<1x128xf32>
    %12 = tpu.iota {dimensions = array<i32: 0>} : vector<4x1x128xi32>
    %13 = vector.shape_cast %3 : vector<1x128xi32> to vector<1x1x128xi32>
    %14 = vector.broadcast %13 : vector<1x1x128xi32> to vector<4x1x128xi32>
    %15 = arith.cmpi eq, %12, %14 : vector<4x1x128xi32>
    %cst_7 = arith.constant 0.000000e+00 : f32
    %16 = vector.broadcast %cst_7 : f32 to vector<4x1x128xf32>
    %17 = arith.select %15, %1, %16 : vector<4x1x128xi1>, vector<4x1x128xf32>
    %cst_8 = arith.constant dense<0.000000e+00> : vector<1x128xf32>
    %18 = vector.multi_reduction <add>, %17, %cst_8 [0] : vector<4x1x128xf32> to vector<1x128xf32>
    %19 = arith.subf %11, %18 : vector<1x128xf32>
    %c0_i32 = arith.constant 0 : i32
    %20 = arith.cmpi ne, %arg1, %c0_i32 : i32
    %21 = arith.extui %20 : i1 to i32
    %c0_i32_9 = arith.constant 0 : i32
    %22 = arith.cmpi ne, %21, %c0_i32_9 : i32
    scf.if %22 {
      %c0_12 = arith.constant 0 : index
      %c0_13 = arith.constant 0 : index
      %c0_14 = arith.constant 0 : index
      %c0_15 = arith.constant 0 : index
      %26 = vector.load %arg4[%c0_12, %c0_13, %c0_14, %c0_15] : memref<1x1x1x128xf32, #tpu.memory_space<vmem>>, vector<1x1x1x128xf32>
      %27 = vector.shape_cast %26 : vector<1x1x1x128xf32> to vector<1x128xf32>
      %28 = vector.shape_cast %19 : vector<1x128xf32> to vector<1x1x1x128xf32>
      tpu.vector_store %arg4[%c0_12, %c0_13, %c0_14, %c0_15], %28 {strides = array<i32>} : memref<1x1x1x128xf32, #tpu.memory_space<vmem>>, vector<1x1x1x128xf32>,
    } else {
    }
    %c0_i32_10 = arith.constant 0 : i32
    %23 = arith.cmpi eq, %arg1, %c0_i32_10 : i32
    %24 = arith.extui %23 : i1 to i32
    %c0_i32_11 = arith.constant 0 : i32
    %25 = arith.cmpi ne, %24, %c0_i32_11 : i32
    scf.if %25 {
      %26 = tpu.iota {dimensions = array<i32: 0>} : vector<1x128xi32>
      %27 = tpu.iota {dimensions = array<i32: 1>} : vector<1x128xi32>
      %c1_i32 = arith.constant 1 : i32
      %28 = arith.muli %arg1, %c1_i32 : i32
      %29 = vector.broadcast %28 : i32 to vector<1x128xi32>
      %30 = arith.addi %29, %26 : vector<1x128xi32>
      %c128_i32 = arith.constant 128 : i32
      %31 = vector.broadcast %c128_i32 : i32 to vector<1x128xi32>
      %32 = arith.muli %30, %31 : vector<1x128xi32>
      %33 = arith.addi %32, %27 : vector<1x128xi32>
      %c64_i32 = arith.constant 64 : i32
      %34 = vector.broadcast %c64_i32 : i32 to vector<1x128xi32>
      %35 = arith.cmpi slt, %33, %34 : vector<1x128xi32>
      %cst_12 = arith.constant 0.000000e+00 : f32
      %36 = vector.broadcast %cst_12 : f32 to vector<1x128xf32>
      %37 = arith.select %35, %19, %36 : vector<1x128xi1>, vector<1x128xf32>
      %c0_13 = arith.constant 0 : index
      %c0_14 = arith.constant 0 : index
      %c0_15 = arith.constant 0 : index
      %c0_16 = arith.constant 0 : index
      %38 = vector.load %arg4[%c0_13, %c0_14, %c0_15, %c0_16] : memref<1x1x1x128xf32, #tpu.memory_space<vmem>>, vector<1x1x1x128xf32>
      %39 = vector.shape_cast %38 : vector<1x1x1x128xf32> to vector<1x128xf32>
      %40 = vector.shape_cast %37 : vector<1x128xf32> to vector<1x1x1x128xf32>
      tpu.vector_store %arg4[%c0_13, %c0_14, %c0_15, %c0_16], %40 {strides = array<i32>} : memref<1x1x1x128xf32, #tpu.memory_space<vmem>>, vector<1x1x1x128xf32>,
    } else {
    }
    return
  }
  func.func @transform_0(%arg0: i32, %arg1: i32) -> (i32, i32, i32, i32) {
    %c0_i32 = arith.constant 0 : i32
    %c0_i32_0 = arith.constant 0 : i32
    %c0_i32_1 = arith.constant 0 : i32
    return %arg0, %c0_i32, %arg1, %c0_i32_0 : i32, i32, i32, i32
  }
  func.func @transform_1(%arg0: i32, %arg1: i32) -> (i32, i32, i32) {
    %c0_i32 = arith.constant 0 : i32
    %c0_i32_0 = arith.constant 0 : i32
    return %arg0, %arg1, %c0_i32 : i32, i32, i32
  }
  func.func @transform_2(%arg0: i32, %arg1: i32) -> (i32, i32, i32, i32) {
    %c0_i32 = arith.constant 0 : i32
    %c0_i32_0 = arith.constant 0 : i32
    %c0_i32_1 = arith.constant 0 : i32
    return %arg0, %arg1, %c0_i32, %c0_i32_0 : i32, i32, i32, i32
  }
}

</mosaic_0001>

<bundles_post_ra>
// kernel: tpu_custom_call.1
= control target key start
LH: loop header
LB: loop body
LE: loop exit
PB: predicated region body
PF: predicated region fallthrough
CT: control target
= control target key end

     0   :  { %7 = vsyncpa [#allocation3], 0  ;;  %s788_s0 = inlined_call_operand.hbm [shape: f32[2,4,1,128], index: 0, kind: input, shape index: {}]   ;;  %s789_s1 = inlined_call_operand.vmem [shape: s32[2,1,128], index: 1, kind: input, shape index: {}]   ;;  %s790_s2 = inlined_call_operand.hbm [shape: f32[2,1,1,128], index: 2, kind: output, shape index: {}]  }
   0x1   :  { %9 = vsyncpa [#allocation3 + $0x1], 0 }
   0x2   :  { %10 = vsyncpa [#allocation4], 0 }
   0x3   :  { %12 = vsyncpa [#allocation4 + $0x1], 0  ;;  %s601_s9 = smov 0   ;;  %s603_s10 = smov 0  }
   0x4   :  { %s605_s11 = smov 0   ;;  %s607_s12 = smov 0  }
   0x5   :  { %s609_s13 = smov 0   ;;  %s611_s14 = smov 0  }
   0x6 LB: > { %s381_s15 = sadd.s32 4294967295, %s580_s14   ;;  %s382_s16 = sadd.s32 4294967294, %s580_s14   ;;  %s580_s14 = sphi %s611_s14, %s18_s14   ;;  %s576_s13 = sphi %s609_s13, %s805_s13   ;;  %s572_s12 = sphi %s607_s12, %s804_s12   ;;  %s568_s11 = sphi %s605_s11, %s803_s11   ;;  %s564_s10 = sphi %s603_s10, %s802_s10   ;;  %s560_s9 = sphi %s601_s9, %s801_s9  }
   0x7   : > { %s30_s17 = sadd.s32 1, %s576_s13  ;;  %s39_s18 = sadd.s32 1, %s568_s11 }
   0x8   : > { %p32_p0 = scmp.ge.s32.totalorder %s30_s17, 2  ;;  %p46_p1 = scmp.ne.s32.totalorder %s568_s11, %s564_s10 }
   0x9   : > { %p47_p2 = scmp.eq.s32.totalorder %s580_s14, 0  ;;  %p52_p3 = scmp.ne.s32.totalorder %s564_s10, %s560_s9 }
   0xa   : > { %s807_s17 = smov (%p32_p0, %s30_s17), 0  ;;  %p53_p5 = scmp.eq.s32.totalorder %s381_s15, 0 }
   0xb   : > { %p642_p4 = por %p47_p2, %p46_p1  ;;  %s34_s20 = ssub.s32 %s576_s13, %s807_s17 }
   0xc   : > { %p106_p6 = scmp.eq.s32.totalorder %s381_s15, 1  ;;  %p37_p7 = scmp.eq.s32.totalorder %s34_s20, 0 }
   0xd   : > { %p648_p8 = por %p53_p5, %p52_p3  ;;  %p112_p10 = scmp.eq.s32.totalorder %s382_s16, 1 }
   0xe   : > { %p652_p9 = por %p106_p6, %p46_p1  ;;  %p406_p13 = scmp.lt.s32.totalorder %s580_s14, 2 }
   0xf   : > { %s657_s23 = scalar_select %p37_p7, %s568_s11, %s39_s18  }
  0x10   : > { %s794_s22 = scalar_select %p652_p9, 1, 0 }
  0x11   : > { %p659_p11 = por %p112_p10, %p52_p3  ;;  %s132_s25 = sand.u32 1, %s568_s11  }
  0x12   : > { %s385_s26 = sshll.u32 %s132_s25, 2  ;;  %s393_s27 = sshll.u32 %s576_s13, 6 }
  0x13   : > { %s795_s24 = scalar_select %p659_p11, 1, 0 }
  0x14   : > { %s670_s30 = scalar_lea.hbm %s788_s0, %s393_s27  ;;  %s136_s3 = scalar_lea.vmem [#allocation2], %s385_s26 }
  0x15   : > { %s144_s4 = sshll.u32 %s136_s3, 4  ;;  %p676_p0 = pnand %p406_p13, %p642_p4  ;;  %s672_s4 = int_to_ptr.vmem [resolvable:$true] %s144_s4 }
  0x16   : > { %s681_s6 = scalar_lea.sflag [#allocation3], %s132_s25  ;;  %s468_s7 = scalar_lea.hbm %s670_s30, 64 }
  0x17   : > { %p469_p2 = scmp.ne.s32.totalorder %s670_s30, %s468_s7  ;;  %p470_p3 = pneg %p676_p0 }
  0x18   : > { %s473_s16 = scalar_lea.hbm %s788_s0, 128  ;;  %p474_p4 = scmp.lt.u32.totalorder %s670_s30, %s788_s0 }
  0x19   : > { %p471_p5 = pnand %p470_p3, %p469_p2  ;;  %p475_p7 = scmp.lt.u32.totalorder %s473_s16, %s468_s7 }
  0x1a   : > { %p477_p13 = scmp.lt.u32.totalorder %s468_s7, %s670_s30 }
  0x1b   : > { %p472_p6 = pneg %p471_p5  ;;  %p476_p10 = por %p475_p7, %p474_p4 }
  0x1d   : > { %p478_p12 = por %p477_p13, %p476_p10 }
  0x1f   : > { %p479_p1 = pnand %p478_p12, %p472_p6 }
  0x21   : > { %482 = shalt.err (!%p479_p1)
}
  0x22   : > { %s483_s20 = scalar_lea.vmem %s672_s4, 64  ;;  %s582_s25 = smov [#allocation2]  }
  0x23   : > { %p484_p2 = scmp.ne.s32.totalorder %s672_s4, %s483_s20  ;;  %s488_s26 = sshll.u32 %s582_s25, 4  ;;  %s489_s26 = int_to_ptr.vmem [resolvable:$false] %s488_s26 }
  0x24   : > { %s490_s27 = scalar_lea.vmem %s489_s26, 128  ;;  %p491_p9 = scmp.lt.s32.totalorder %s672_s4, %s489_s26 }
  0x25   : > { %p486_p5 = pnand %p484_p2, %p470_p3  ;;  %p492_p4 = scmp.lt.s32.totalorder %s490_s27, %s483_s20 }
  0x27   : > { %p487_p11 = pneg %p486_p5  ;;  %p493_p7 = por %p492_p4, %p491_p9 }
  0x29   : > { %p494_p10 = pnand %p493_p7, %p487_p11 }
  0x2b   : > { %497 = shalt.err (!%p494_p10)
}
  0x2c   : > { %s583_s28 = smov 16   ;;  %s584_s29 = smov 1  }
  0x2d   : > { %401 = dma.hbm_to_vmem [thread:$0]  (!%p676_p0), %s670_s30, 64, %s672_s4, %s681_s6, %s583_s28, %s583_s28, %s584_s29  }
  0x2e   : > { %p161_p12 = scmp.lt.s32.totalorder %s580_s14, 3  ;;  %p797_p1 = scmp.ge.s32.totalorder %s580_s14, 1 }
  0x30   : > { %p162_p3 = pnand %p797_p1, %p161_p12 }
  0x31   : > { %s713_s3 = sand.u32 (!%p162_p3), 1, %s564_s10  }
  0x32   : > { %165 = sbr.rel (%p162_p3) target bundleno = 121 (0x79), region = 28  ;;  %s389_s7 = sshll.u32 (!%p162_p3), %s713_s3, 2 }
  0x33   : > { %s168_s8 = scalar_lea.sflag (!%p162_p3), [#allocation3], %s713_s3  ;;  %s171_s15 = scalar_lea.vmem (!%p162_p3), [#allocation2], %s389_s7 }
  0x39   : > { %551 = dma.done.wait (%p648_p8), %s168_s8, 64  }
  0x3a   : > { %553 = vsyncadd (%p648_p8), %s168_s8, 4294967232  ;;  %v208_v0 = vlaneseq  ;;  %v203_v1 = vld [vmem:[%s171_s15] sm:$0x1]  ;;  %v204_v2 = vld [vmem:[%s171_s15 + $0x1] sm:$0x1]  ;;  %p197_p8 = scmp.lt.s32.totalorder %s572_s12, 1 }
  0x3b   : > { %v205_v3 = vld [vmem:[%s171_s15 + $0x2] sm:$0x1]  ;;  %v206_v4 = vld [vmem:[%s171_s15 + $0x3] sm:$0x1]  ;;  %vm231_vm1 = vcmask 1040384   ;;  %s196_s6 = scalar_lea.vmem [#allocation5], %s713_s3 }
  0x3c   : > { %vm210_vm0 = vcmp.lt.s32.totalorder %v208_v0, 128  ;;  %s198_s21 = scalar_select %p197_p8, %s572_s12, 1  ;;  %v268_v37 = vshrl.u32 %v208_v0, 7  ;;  %v270_v41 = vand.u32 127, %v208_v0 }
  0x3d   : > { %v212_v5 = vsel %vm210_vm0, %v203_v1, -inf  ;;  %v213_v6 = vsel %vm210_vm0, %v204_v2, -inf  ;;  %v214_v7 = vsel %vm210_vm0, %v205_v3, -inf  ;;  %v215_v8 = vsel %vm210_vm0, %v206_v4, -inf  ;;  %s292_s16 = sshll.u32 %s196_s6, 4  ;;  %s390_s18 = sshll.u32 %s572_s12, 4  ;;  %s736_s16 = int_to_ptr.vmem [resolvable:$true] %s292_s16 }
  0x3e   : > { %v216_v9 = vmax.f32 %v212_v5, %v213_v6  ;;  %v217_v10 = vmax.f32 %v214_v7, %v215_v8  ;;  %s202_s5 = scalar_lea.vmem %s789_s1, %s198_s21  ;;  %v273_v42 = vmul.u32 128, %v268_v37  ;;  %s741_s25 = scalar_lea.hbm %s790_s2, %s390_s18 }
  0x3f   : > { %v207_v21 = vld [vmem:[%s202_s5] sm:$0x1]  ;;  %s279_s26 = scalar_lea.sflag [#allocation4], %s713_s3  ;;  %s498_s27 = scalar_lea.vmem %s736_s16, 16 }
  0x40   : > { %v218_v11 = vmax.f32 %v216_v9, %v217_v10  ;;  %vm242_vm2 = vcmp.eq.s32.totalorder %v207_v21, 0  ;;  %vm243_vm3 = vcmp.eq.s32.totalorder %v207_v21, 1  ;;  %vm244_vm4 = vcmp.eq.s32.totalorder %v207_v21, 2  ;;  %p499_p9 = scmp.ne.s32.totalorder %s736_s16, %s498_s27  ;;  %p798_p11 = scmp.ne.s32.totalorder %s794_s22, 0 }
  0x41   : > { %v246_v31 = vsel %vm242_vm2, %v203_v1, 0.0  ;;  %v247_v32 = vsel %vm243_vm3, %v204_v2, 0.0  ;;  %v248_v36 = vsel %vm244_vm4, %v205_v3, 0.0  ;;  %vm245_vm5 = vcmp.eq.s32.totalorder %v207_v21, 3  ;;  %s585_s12 = smov [#allocation5]  }
  0x42   : > { %v219_v12 = vsub.f32 %v203_v1, %v218_v11  ;;  %v220_v13 = vsub.f32 %v204_v2, %v218_v11  ;;  %v221_v14 = vsub.f32 %v205_v3, %v218_v11  ;;  %v222_v15 = vsub.f32 %v206_v4, %v218_v11  ;;  %p500_p0 = pnand %p499_p9, %p798_p11  ;;  %s502_s28 = sshll.u32 %s585_s12, 4  ;;  %s503_s28 = int_to_ptr.vmem [resolvable:$false] %s502_s28 }
  0x43   : > { %v250_v34 = vsel %vm231_vm1, %v246_v31, 0.0  ;;  %v251_v35 = vsel %vm231_vm1, %v247_v32, 0.0  ;;  %v253_v39 = vsel %vm231_vm1, %v248_v36, 0.0  ;;  %v249_v40 = vsel %vm245_vm5, %v206_v4, 0.0  ;;  %s504_s29 = scalar_lea.vmem %s503_s28, 32  ;;  %p505_p13 = scmp.lt.s32.totalorder %s736_s16, %s503_s28 }
  0x44   : > { %v223_v16 = vmul.f32 1.442695, %v219_v12  ;;  %v225_v17 = vmul.f32 1.442695, %v220_v13  ;;  %v227_v18 = vmul.f32 1.442695, %v221_v14  ;;  %v252_v38 = vadd.f32 %v251_v35, %v250_v34  ;;  %p501_p6 = pneg %p500_p0  ;;  %p506_p2 = scmp.lt.s32.totalorder %s504_s29, %s498_s27 }
  0x45   : > { %v229_v19 = vmul.f32 1.442695, %v222_v15  ;;  %v255_v44 = vsel %vm231_vm1, %v249_v40, 0.0  ;;  %v274_v46 = vadd.s32 %v273_v42, %v270_v41 }
  0x46   : > { %458 = vpow2.f32 %v223_v16  ;;  %v254_v43 = vadd.f32 %v253_v39, %v252_v38  ;;  %p507_p5 = por %p506_p2, %p505_p13 }
  0x47   : > { %460 = vpow2.f32 %v225_v17  ;;  %vm275_vm6 = vcmp.lt.s32.totalorder %v274_v46, 64 }
  0x48   : > { %462 = vpow2.f32 %v227_v18  ;;  %v256_v48 = vadd.f32 %v255_v44, %v254_v43  ;;  %p508_p4 = pnand %p507_p5, %p501_p6 }
  0x49   : > { %464 = vpow2.f32 %v229_v19 }
  0x50   : > { %v459_v20 = vpop.eup %458 }
  0x51   : > { %v461_v22 = vpop.eup %460  ;;  %v232_v23 = vsel %vm231_vm1, %v459_v20, 0.0 }
  0x52   : > { %v463_v24 = vpop.eup %462  ;;  %v233_v25 = vsel %vm231_vm1, %v461_v22, 0.0 }
  0x53   : > { %v465_v26 = vpop.eup %464  ;;  %v234_v27 = vadd.f32 %v233_v25, %v232_v23  ;;  %v235_v28 = vsel %vm231_vm1, %v463_v24, 0.0 }
  0x54   : > { %v237_v29 = vsel %vm231_vm1, %v465_v26, 0.0 }
  0x55   : > { %v236_v30 = vadd.f32 %v235_v28, %v234_v27 }
  0x57   : > { %v238_v33 = vadd.f32 %v237_v29, %v236_v30 }
  0x59   : > { %466 = vlog2.f32 %v238_v33 }
  0x63   : > { %v467_v45 = vpop.eup %466 }
  0x64   : > { %v240_v47 = vmul.f32 0.6931472, %v467_v45 }
  0x66   : > { %v241_v49 = vadd.f32 %v240_v47, %v218_v11 }
  0x68   : > { %v257_v50 = vsub.f32 %v241_v49, %v256_v48 }
  0x6a   : > { %v276_v51 = vsel %vm275_vm6, %v257_v50, 0.0 }
  0x6b   : > { %277 = vst [vmem:[%s196_s6] sm:$0x1] %v276_v51 }
  0x6c   : > { %511 = shalt.err (!%p508_p4)
}
  0x6d   : > { %s512_s3 = scalar_lea.hbm %s741_s25, 16  ;;  %s516_s15 = scalar_lea.hbm %s790_s2, 32 }
  0x6e   : > { %p513_p7 = scmp.ne.s32.totalorder %s741_s25, %s512_s3  ;;  %p517_p1 = scmp.lt.u32.totalorder %s741_s25, %s790_s2 }
  0x6f   : > { %p518_p3 = scmp.lt.u32.totalorder %s516_s15, %s512_s3  ;;  %p520_p9 = scmp.lt.u32.totalorder %s512_s3, %s741_s25 }
  0x70   : > { %p514_p10 = pnand %p513_p7, %p798_p11 }
  0x71   : > { %p519_p8 = por %p518_p3, %p517_p1 }
  0x72   : > { %p515_p12 = pneg %p514_p10 }
  0x73   : > { %p521_p0 = por %p520_p9, %p519_p8 }
  0x75   : > { %p522_p6 = pnand %p521_p0, %p515_p12 }
  0x77   : > { %525 = shalt.err (!%p522_p6)
}
  0x78   : > { %396 = dma.vmem_to_hbm [thread:$0]  (%p798_p11), %s736_s16, 16, %s741_s25, %s279_s26  }
  0x79 PF: > { %s304_s4 = sand.u32 1, %s560_s9   ;;  %p799_p13 = scmp.ne.s32.totalorder %s795_s24, 0 }
  0x7a   : > { %p800_p2 = scmp.ge.s32.totalorder %s580_s14, 2  ;;  %s305_s5 = scalar_lea.sflag [#allocation4], %s304_s4 }
  0x7c   : > { %p403_p5 = pnand %p800_p2, %p799_p13 }
  0x7e   : > { %555 = dma.done.wait (!%p403_p5), %s305_s5, 16  }
  0x7f   : > { %557 = vsyncadd (!%p403_p5), %s305_s5, 4294967280  ;;  %s18_s14 = sadd.s32 1, %s580_s14   ;;  %s801_s9 = smov %s564_s10 }
  0x80   : > { %p15_p4 = scmp.ge.s32.totalorder %s18_s14, 4   ;;  %s802_s10 = smov %s568_s11 }
  0x81   : > { %s803_s11 = smov %s657_s23  ;;  %s804_s12 = smov %s576_s13 }
  0x82   : > { %s805_s13 = smov %s807_s17  ;;  %17 = sbr.rel (!%p15_p4) target bundleno = 6 (0x6), region = 84 }
  0x89   :  { %309 = vsyncpa [#allocation3], 1 }
  0x8a   :  { %311 = vsyncpa [#allocation3 + $0x1], 1 }
  0x8b   :  { %312 = vsyncpa [#allocation4], 1 }
  0x8c   :  { %314 = vsyncpa [#allocation4 + $0x1], 1 }

</bundles_post_ra>
